<compile_context>
chip_gen: v6e
topology: v6e:2x2x1
jax: 0.10.0
libtpu: 0.0.40
codegen_flags: <defaults>
</compile_context>

<pallas_src>
import functools

import jax
import jax.numpy as jnp
from jax.experimental import pallas as pl
from jax.experimental.pallas import tpu as pltpu

_LANE = 128
_MIB = 1024 * 1024


def _device_kind():
    try:
        return jax.devices()[0].device_kind.lower()
    except Exception:
        return ""


def _mish_kernel(x_ref, o_ref, *, compute_dtype):
    x = x_ref[...].astype(compute_dtype)
    # mish(x) = x * tanh(softplus(x)).  With t = exp(x):
    #   tanh(log1p(t)) = ((1+t)^2 - 1) / ((1+t)^2 + 1) = (t^2 + 2t) / (t^2 + 2t + 2)
    # -> one EUP exp instead of exp + log1p + tanh.  Clamp exp's argument so
    # t^2 stays finite; for x >= 20 the ratio is already 1.0 to below f32 (and
    # bf16) epsilon, so the clamp is exact.  For very negative x, t underflows
    # to 0 and the ratio -> 0, which is also correct.
    t = jnp.exp(jnp.minimum(x, 20.0))
    num = t * (t + 2.0)
    # Precise divide kept (EUP reciprocal seed + VPU Newton step hidden under
    # the HBM-bound stream); approx reciprocal would cost ~2^-12 accuracy.
    y = x * num / (num + 2.0)
    o_ref[...] = y.astype(o_ref.dtype)


def _mish_jnp(x):
    """Pure-jnp reference / tail path (numerically stable softplus)."""
    xf = x.astype(jnp.float32)
    sp = jnp.maximum(xf, 0.0) + jnp.log1p(jnp.exp(-jnp.abs(xf)))
    return (xf * jnp.tanh(sp)).astype(x.dtype)


def mish(x, *, target_block_bytes=None):
    """Mish forward.  Accepts arbitrary-shaped input (e.g. NCHW); elementwise."""
    orig_shape = x.shape
    orig_dtype = x.dtype
    n = x.size
    if n == 0:
        return x

    kind = _device_kind()
    is_v7 = "7" in kind                     # e.g. "tpu7x"
    bf16_native = is_v7 or ("v6" in kind)   # v5e has no bf16 VPU/EUP

    if target_block_bytes is None:
        # v7x: bigger blocks amortize the fixed per-grid-step cost at 3.2 TB/s.
        # v5e/v6e: 2 MiB already sits on the ~85% HBM-roofline plateau and
        # keeps 2x-in + 2x-out buffers inside the 16 MiB scoped default.
        target_block_bytes = 4 * _MIB if is_v7 else 2 * _MIB

    itemsize = jnp.dtype(orig_dtype).itemsize
    x_flat = jnp.reshape(x, (-1,))

    # Widest lane-dense slab width that divides n exactly (no copies at all in
    # the common case).
    slab_w = None
    for w in (2048, 1024, 512, 256, 128):
        if n % w == 0:
            slab_w = w
            break

    if slab_w is None:
        # Ragged size: kernel runs on the 128-aligned prefix only; the <=127
        # element tail is computed with plain jnp.  No full-tensor pad/slice.
        slab_w = _LANE
        n_main = (n // _LANE) * _LANE
    else:
        n_main = n
    n_tail = n - n_main

    out_parts = []
    if n_main > 0:
        rows = n_main // slab_w
        x2d = jnp.reshape(x_flat[:n_main] if n_tail else x_flat, (rows, slab_w))

        # Sublane granularity (packed dtypes tile deeper).
        sub = {4: 8, 2: 16, 1: 32}.get(itemsize, 8)
        block_rows = max(sub, (target_block_bytes // (slab_w * itemsize) // sub) * sub)

        # Guarantee enough grid steps for DMA/compute overlap (and so both v7x
        # TensorCores get blocks) once the tensor is bigger than ~512 KiB.
        min_steps = 8 if is_v7 else 4
        if n_main * itemsize >= 512 * 1024:
            cap = (rows // min_steps // sub) * sub
            if cap >= sub:
                block_rows = min(block_rows, cap)
        if block_rows >= rows:
            block_rows = rows  # single full-extent block (small tensors)

        block_bytes = block_rows * slab_w * itemsize
        # Explicit scoped-VMEM budget: 4 pipeline buffers + slack, capped at
        # v7x's 32 MiB scoped limit (v5e/v6e effectively keep their default).
        vmem_limit = int(min(32 * _MIB, max(16 * _MIB, 6 * block_bytes)))

        # bf16 I/O keeps bf16 math on v6e/v7x; f32 math everywhere else.
        if orig_dtype == jnp.bfloat16 and bf16_native:
            compute_dtype = jnp.bfloat16
        else:
            compute_dtype = jnp.float32

        kernel = functools.partial(_mish_kernel, compute_dtype=compute_dtype)
        grid = (pl.cdiv(rows, block_rows),)

        def run(dim_semantics):
            return pl.pallas_call(
                kernel,
                out_shape=jax.ShapeDtypeStruct((rows, slab_w), orig_dtype),
                grid_spec=pltpu.PrefetchScalarGridSpec(
                    num_scalar_prefetch=0,
                    grid=grid,
                    in_specs=[pl.BlockSpec((block_rows, slab_w), lambda i: (i, 0))],
                    out_specs=pl.BlockSpec((block_rows, slab_w), lambda i: (i, 0)),
                ),
                compiler_params=pltpu.CompilerParams(
                    dimension_semantics=dim_semantics,
                    vmem_limit_bytes=vmem_limit,
                ),
            )(x2d)

        if is_v7:
            # Actually shard the grid across the two TensorCores on v7x.
            try:
                out2d = run((pltpu.CORE_PARALLEL,))
            except Exception:
                out2d = run(("parallel",))
        else:
            out2d = run(("parallel",))

        out_parts.append(jnp.reshape(out2d, (-1,)))

    if n_tail > 0:
        out_parts.append(_mish_jnp(x_flat[n_main:]))

    out_flat = out_parts[0] if len(out_parts) == 1 else jnp.concatenate(out_parts)
    return jnp.reshape(out_flat, orig_shape)


if __name__ == "__main__":
    key = jax.random.PRNGKey(0)

    # NCHW-like input matching the conv stack this activation sits in.
    x = jax.random.normal(key, (2, 4, 16, 16), dtype=jnp.float32)
    out = jax.block_until_ready(mish(x))
    ref = _mish_jnp(x)
    assert out.shape == x.shape and out.dtype == x.dtype
    assert jnp.allclose(out, ref, atol=1e-5, rtol=1e-5), "mismatch vs reference"

    # Multi-block / pipelined path: tiny blocks force several grid steps and a
    # wider value range exercises the exp clamp and underflow branches.
    x2 = jax.random.normal(jax.random.PRNGKey(1), (8, 16, 32, 32), jnp.float32) * 4.0
    out2 = jax.block_until_ready(mish(x2, target_block_bytes=64 * 1024))
    assert jnp.allclose(out2, _mish_jnp(x2), atol=1e-5, rtol=1e-5), "mismatch (multi-block)"

    # Ragged size: 128-aligned prefix through the kernel, jnp tail stitched on.
    x3 = jax.random.normal(jax.random.PRNGKey(2), (3, 5, 11), jnp.float32)
    out3 = jax.block_until_ready(mish(x3))
    assert jnp.allclose(out3, _mish_jnp(x3), atol=1e-5, rtol=1e-5), "mismatch (ragged)"

    # bf16 I/O (bf16 math on v6e/v7x, f32 math on v5e).
    x4 = jax.random.normal(jax.random.PRNGKey(3), (2, 4, 16, 16), dtype=jnp.bfloat16)
    out4 = jax.block_until_ready(mish(x4))
    assert jnp.allclose(out4.astype(jnp.float32), _mish_jnp(x4).astype(jnp.float32),
                        atol=5e-2, rtol=5e-2), "mismatch (bf16)"

    print("KERNEL_OK")
</pallas_src>

<mosaic_0001>
module attributes {stable_mosaic.version = 11 : i64} {
  func.func @_mish_kernel(%arg0: i32, %arg1: memref<1x2048xf32, #tpu.memory_space<vmem>>, %arg2: memref<1x2048xf32, #tpu.memory_space<vmem>>) attributes {dimension_semantics = [#tpu.dimension_semantics<parallel>], iteration_bounds = array<i64: 1>, scalar_prefetch = 0 : i64, scratch_operands = 0 : i64, tpu.core_type = #tpu.core_type<tc>, window_params = [{transform_indices = @transform_0, window_bounds = array<i64: 1, 2048>}, {transform_indices = @transform_1, window_bounds = array<i64: 1, 2048>}]} {
    %c0 = arith.constant 0 : index
    %c0_0 = arith.constant 0 : index
    %0 = vector.load %arg1[%c0, %c0_0] : memref<1x2048xf32, #tpu.memory_space<vmem>>, vector<1x2048xf32>
    %cst = arith.constant 2.000000e+01 : f32
    %1 = vector.broadcast %cst : f32 to vector<1x2048xf32>
    %2 = arith.minimumf %0, %1 : vector<1x2048xf32>
    %3 = math.exp %2 : vector<1x2048xf32>
    %cst_1 = arith.constant 2.000000e+00 : f32
    %4 = vector.broadcast %cst_1 : f32 to vector<1x2048xf32>
    %5 = arith.addf %3, %4 : vector<1x2048xf32>
    %6 = arith.mulf %3, %5 : vector<1x2048xf32>
    %7 = arith.mulf %0, %6 : vector<1x2048xf32>
    %cst_2 = arith.constant 2.000000e+00 : f32
    %8 = vector.broadcast %cst_2 : f32 to vector<1x2048xf32>
    %9 = arith.addf %6, %8 : vector<1x2048xf32>
    %10 = arith.divf %7, %9 : vector<1x2048xf32>
    %c0_3 = arith.constant 0 : index
    %c0_4 = arith.constant 0 : index
    %11 = vector.load %arg2[%c0_3, %c0_4] : memref<1x2048xf32, #tpu.memory_space<vmem>>, vector<1x2048xf32>
    tpu.vector_store %arg2[%c0_3, %c0_4], %10 {strides = array<i32>} : memref<1x2048xf32, #tpu.memory_space<vmem>>, vector<1x2048xf32>,
    return
  }
  func.func @transform_0(%arg0: i32) -> (i32, i32) {
    %c0_i32 = arith.constant 0 : i32
    %c0_i32_0 = arith.constant 0 : i32
    return %arg0, %c0_i32 : i32, i32
  }
  func.func @transform_1(%arg0: i32) -> (i32, i32) {
    %c0_i32 = arith.constant 0 : i32
    %c0_i32_0 = arith.constant 0 : i32
    return %arg0, %c0_i32 : i32, i32
  }
}

</mosaic_0001>

<bundles_post_ra>
// kernel: tpu_custom_call.1
= control target key start
LH: loop header
LB: loop body
LE: loop exit
PB: predicated region body
PF: predicated region fallthrough
CT: control target
= control target key end

     0   :  { %6 = vsyncpa [#allocation3], 0  ;;  %s130_s0 = inlined_call_operand.hbm [shape: f32[1,2048], index: 0, kind: input, shape index: {}]   ;;  %s131_s1 = inlined_call_operand.hbm [shape: f32[1,2048], index: 1, kind: output, shape index: {}]  }
   0x1   :  { %7 = vsyncpa [#allocation4], 0  ;;  %s112_s6 = smov [#allocation2]  }
   0x2   :  { %s14_s7 = sshll.u32 %s112_s6, 4  ;;  %s15_s7 = int_to_ptr.vmem [resolvable:$true] %s14_s7 }
   0x3   :  { %s76_s8 = scalar_lea.vmem %s15_s7, 256  ;;  %p81_p1 = scmp.lt.s32.totalorder %s15_s7, %s15_s7 }
   0x4   :  { %p77_p0 = scmp.ne.s32.totalorder %s15_s7, %s76_s8  ;;  %p82_p2 = scmp.lt.s32.totalorder %s76_s8, %s76_s8 }
   0x6   :  { %p83_p3 = por %p82_p2, %p81_p1 }
   0x8   :  { %p84_p4 = pnand %p83_p3, %p77_p0 }
   0xa   :  { %87 = shalt.err (!%p84_p4)
}
   0xb   :  { %17 = dma.hbm_to_vmem [thread:$0]  %s130_s0, 256, %s15_s7, [#allocation3]  }
   0xc   :  { %108 = dma.done.wait [#allocation3], 256  }
   0xd   :  { %109 = vsyncadd [#allocation3], 4294967040  ;;  %v21_v0 = vld [vmem:[#allocation2] sm:$0xff]  ;;  %v22_v1 = vld [vmem:[#allocation2 + $0x8] sm:$0xff]  ;;  %s113_s0 = smov [#allocation5]  }
   0xe   :  { %v23_v2 = vmin.f32 %v21_v0, 20.0  ;;  %v24_v3 = vmin.f32 %v22_v1, 20.0  ;;  %s49_s11 = sshll.u32 %s113_s0, 4  ;;  %s50_s11 = int_to_ptr.vmem [resolvable:$true] %s49_s11 }
   0xf   :  { %s88_s12 = scalar_lea.vmem %s50_s11, 256  ;;  %p93_p6 = scmp.lt.s32.totalorder %s50_s11, %s50_s11 }
  0x10   :  { %v25_v4 = vmul.f32 1.442695, %v23_v2  ;;  %v27_v5 = vmul.f32 1.442695, %v24_v3  ;;  %p89_p5 = scmp.ne.s32.totalorder %s50_s11, %s88_s12  ;;  %p94_p7 = scmp.lt.s32.totalorder %s88_s12, %s88_s12 }
  0x12   :  { %60 = vpow2.f32 %v25_v4  ;;  %p95_p8 = por %p94_p7, %p93_p6 }
  0x13   :  { %62 = vpow2.f32 %v27_v5 }
  0x14   :  { %p96_p9 = pnand %p95_p8, %p89_p5 }
  0x1f   :  { %v61_v6 = vpop.eup %60 }
  0x20   :  { %v63_v7 = vpop.eup %62  ;;  %v29_v8 = vadd.f32 2.0, %v61_v6 }
  0x21   :  { %v30_v9 = vadd.f32 2.0, %v63_v7 }
  0x22   :  { %v31_v10 = vmul.f32 %v61_v6, %v29_v8 }
  0x23   :  { %v32_v11 = vmul.f32 %v63_v7, %v30_v9 }
  0x24   :  { %v35_v12 = vadd.f32 2.0, %v31_v10  ;;  %v33_v14 = vmul.f32 %v31_v10, %v21_v0 }
  0x25   :  { %v36_v13 = vadd.f32 2.0, %v32_v11  ;;  %v34_v15 = vmul.f32 %v32_v11, %v22_v1 }
  0x26   :  { %64 = vrcp.f32 %v35_v12 }
  0x27   :  { %66 = vrcp.f32 %v36_v13 }
  0x33   :  { %v65_v16 = vpop.eup %64 }
  0x34   :  { %v67_v17 = vpop.eup %66  ;;  %v38_v18 = vmul.f32 %v65_v16, %v33_v14 }
  0x35   :  { %v40_v19 = vmul.f32 %v67_v17, %v34_v15 }
  0x36   :  { %41 = vst [vmem:[#allocation5] sm:$0xff] %v38_v18 }
  0x37   :  { %42 = vst [vmem:[#allocation5 + $0x8] sm:$0xff] %v40_v19 }
  0x38   :  { %99 = shalt.err (!%p96_p9)
}
  0x39   :  { %52 = dma.vmem_to_hbm [thread:$0]  %s50_s11, 256, %s131_s1, [#allocation4]  }
  0x3a   :  { %110 = dma.done.wait [#allocation4], 256  }
  0x3b   :  { %111 = vsyncadd [#allocation4], 4294967040 }
  0x3c   :  { %56 = vsyncpa [#allocation3], 1 }
  0x3d   :  { %57 = vsyncpa [#allocation4], 1 }

</bundles_post_ra>
